<compile_context>
chip_gen: v7x
topology: tpu7x:2x2x1
jax: 0.10.0
libtpu: 0.0.40
codegen_flags: <defaults>
</compile_context>

<pallas_src>
import functools
import math

import jax
import jax.numpy as jnp
import numpy as np
from jax.experimental import pallas as pl
from jax.experimental.pallas import tpu as pltpu


def _mhsa_kernel(x_ref, gamma_ref, beta_ref, wqkv_ref, bqkv_ref, wout_ref, bout_ref,
                 o_ref, *, num_heads, seq_len, eps):
    M, E = x_ref.shape                     # M = batch_block * seq_len rows
    L = seq_len
    B = M // L                             # batch elements in this block
    H = num_heads
    hd = E // H

    x = x_ref[...].astype(jnp.float32)     # (M, E)

    # ---- LayerNorm over the feature dim (f32 on the VPU) ----
    mean = jnp.mean(x, axis=-1, keepdims=True)
    xc = x - mean
    var = jnp.mean(xc * xc, axis=-1, keepdims=True)
    xn = xc * jax.lax.rsqrt(var + eps)
    xn = xn * gamma_ref[0].astype(jnp.float32) + beta_ref[0].astype(jnp.float32)

    # ---- Fused QKV projection: one (M, E) x (E, 3E) MXU matmul ----
    # 1/sqrt(head_dim) is pre-folded into the Q columns of wqkv / bqkv.
    qkv = jnp.dot(xn.astype(wqkv_ref.dtype), wqkv_ref[...],
                  preferred_element_type=jnp.float32)
    qkv = qkv + bqkv_ref[0].astype(jnp.float32)                  # (M, 3E)

    # ---- Split into (H*B, L, hd) stacks (lane slices + leading-axis concat;
    #      all matmuls below are batched over every (head, batch) pair) ----
    def split_heads(col0):
        return jnp.concatenate(
            [qkv[:, col0 + h * hd: col0 + (h + 1) * hd].reshape(B, L, hd)
             for h in range(H)], axis=0)                         # (H*B, L, hd)

    q = split_heads(0)
    k = split_heads(E)
    v = split_heads(2 * E)

    # ---- Batched scaled-dot-product attention over all (head, batch) pairs ----
    s = jnp.einsum('gqd,gkd->gqk', q, k,
                   preferred_element_type=jnp.float32)           # (H*B, L, L)
    m = jnp.max(s, axis=-1, keepdims=True)
    p = jnp.exp(s - m)                                           # unnormalized
    denom = jnp.sum(p, axis=-1, keepdims=True)                   # (H*B, L, 1)
    ctx = jnp.einsum('gqk,gkd->gqd', p, v,
                     preferred_element_type=jnp.float32)         # (H*B, L, hd)
    # Deferred softmax normalization: one approx reciprocal + broadcast multiply.
    ctx = ctx * pl.reciprocal(denom, approx=True)

    # ---- Merge heads back to (M, E) (head-major columns match w_out rows) ----
    attn_cat = jnp.concatenate(
        [ctx[h * B:(h + 1) * B].reshape(M, hd) for h in range(H)], axis=-1)

    # ---- Output projection ----
    out = jnp.dot(attn_cat.astype(wout_ref.dtype), wout_ref[...],
                  preferred_element_type=jnp.float32)
    out = out + bout_ref[0].astype(jnp.float32)

    # Dropout: eval mode -> identity.
    o_ref[...] = out.astype(o_ref.dtype)


def prepare_params(ln_weight, ln_bias, in_proj_weight, in_proj_bias,
                   out_proj_weight, out_proj_bias, *, num_heads,
                   matmul_dtype=jnp.float32):
    """One-time host-side packing of PyTorch-layout parameters for the kernel.

    - Transposes the projection weights so in-kernel projections are `x @ W`.
    - Folds PyTorch's q /= sqrt(head_dim) into the Q columns of the QKV
      weight & bias (removes an (M, E) VPU multiply per kernel step).
    - matmul_dtype=jnp.bfloat16 selects the bf16 MXU path on v6e/v7x.
    """
    E = int(ln_weight.shape[-1])
    head_dim = E // num_heads
    scale = 1.0 / math.sqrt(head_dim)
    col_scale = jnp.concatenate(
        [jnp.full((E,), scale, jnp.float32), jnp.ones((2 * E,), jnp.float32)])

    w_qkv = jnp.asarray(in_proj_weight, jnp.float32).T * col_scale[None, :]   # (E, 3E)
    b_qkv = (jnp.asarray(in_proj_bias, jnp.float32) * col_scale).reshape(1, 3 * E)
    w_out = jnp.asarray(out_proj_weight, jnp.float32).T                        # (E, E)
    b_out = jnp.asarray(out_proj_bias, jnp.float32).reshape(1, E)
    gamma = jnp.asarray(ln_weight, jnp.float32).reshape(1, E)
    beta = jnp.asarray(ln_bias, jnp.float32).reshape(1, E)
    return (gamma, beta, w_qkv.astype(matmul_dtype), b_qkv,
            w_out.astype(matmul_dtype), b_out)


def multi_headed_self_attention(x, params, *, num_heads, eps=1e-5,
                                batch_block=None, vmem_limit_bytes=None):
    """x: (N, L, E). Returns (N, L, E). params from prepare_params()."""
    N, L, E = x.shape
    gamma, beta, w_qkv, b_qkv, w_out, b_out = params

    if batch_block is None:
        batch_block = N                       # single grid step (v5e/v6e best)
    assert N % batch_block == 0, "batch_block must divide N"
    num_blocks = N // batch_block
    rows_blk = batch_block * L
    if num_blocks > 1:
        # Keep the sublane dim of partial blocks aligned to the (8, 128) rule.
        assert rows_blk % 8 == 0, "batch_block * L must be a multiple of 8"

    # Row-flattened layout: LN and the projections see (rows, E) directly,
    # no in-kernel lane-splitting reshape needed.
    x2 = x.reshape(N * L, E)

    kernel = functools.partial(_mhsa_kernel, num_heads=num_heads, seq_len=L, eps=eps)

    out2 = pl.pallas_call(
        kernel,
        out_shape=jax.ShapeDtypeStruct((N * L, E), x.dtype),
        grid=(num_blocks,),
        in_specs=[
            pl.BlockSpec((rows_blk, E), lambda i: (i, 0)),        # x rows
            pl.BlockSpec((1, E), lambda i: (0, 0)),               # LN gamma
            pl.BlockSpec((1, E), lambda i: (0, 0)),               # LN beta
            pl.BlockSpec((E, 3 * E), lambda i: (0, 0)),           # W_qkv (q-scale folded)
            pl.BlockSpec((1, 3 * E), lambda i: (0, 0)),           # b_qkv
            pl.BlockSpec((E, E), lambda i: (0, 0)),               # W_out
            pl.BlockSpec((1, E), lambda i: (0, 0)),               # b_out
        ],
        out_specs=pl.BlockSpec((rows_blk, E), lambda i: (i, 0)),
        compiler_params=pltpu.CompilerParams(
            dimension_semantics=("parallel",),
            vmem_limit_bytes=vmem_limit_bytes,
        ),
    )(x2, gamma, beta, w_qkv, b_qkv, w_out, b_out)
    return out2.reshape(N, L, E)


def _reference(x, ln_w, ln_b, in_w, in_b, out_w, out_b, num_heads, eps=1e-5):
    """Pure-JAX reference reproducing PyTorch semantics (eval mode)."""
    N, L, E = x.shape
    hd = E // num_heads
    mean = jnp.mean(x, -1, keepdims=True)
    var = jnp.mean((x - mean) ** 2, -1, keepdims=True)
    xn = (x - mean) / jnp.sqrt(var + eps) * ln_w + ln_b
    qkv = xn @ in_w.T + in_b
    q, k, v = qkv[..., :E], qkv[..., E:2 * E], qkv[..., 2 * E:]
    q = q.reshape(N, L, num_heads, hd).transpose(0, 2, 1, 3) / math.sqrt(hd)
    k = k.reshape(N, L, num_heads, hd).transpose(0, 2, 1, 3)
    v = v.reshape(N, L, num_heads, hd).transpose(0, 2, 1, 3)
    s = jnp.einsum('nhqd,nhkd->nhqk', q, k)
    p = jax.nn.softmax(s, axis=-1)
    o = jnp.einsum('nhqk,nhkd->nhqd', p, v).transpose(0, 2, 1, 3).reshape(N, L, E)
    return o @ out_w.T + out_b


if __name__ == "__main__":
    # Small shapes implied by the module: d_model=32, num_heads=4, seq=8, batch=2
    N, L, E, H = 2, 8, 32, 4
    key = jax.random.PRNGKey(0)
    k_x, k_w1, k_b1, k_w2, k_b2, k_g, k_bt = jax.random.split(key, 7)

    x = jax.random.normal(k_x, (N, L, E), dtype=jnp.float32)

    # PyTorch-layout parameters (nn.LayerNorm / nn.MultiheadAttention shapes):
    ln_w = jnp.ones((E,), jnp.float32) + 0.1 * jax.random.normal(k_g, (E,))
    ln_b = 0.1 * jax.random.normal(k_bt, (E,))
    in_proj_w = jax.random.normal(k_w1, (3 * E, E), jnp.float32) * 0.1
    in_proj_b = jax.random.normal(k_b1, (3 * E,), jnp.float32) * 0.05
    out_proj_w = jax.random.normal(k_w2, (E, E), jnp.float32) * 0.1
    out_proj_b = jax.random.normal(k_b2, (E,), jnp.float32) * 0.05

    # One-time packing (transpose, fold q scale). Use matmul_dtype=jnp.bfloat16
    # on v6e/v7x for the bf16 MXU path (loosen tolerances accordingly).
    params = prepare_params(ln_w, ln_b, in_proj_w, in_proj_b, out_proj_w, out_proj_b,
                            num_heads=H, matmul_dtype=jnp.float32)

    out = multi_headed_self_attention(x, params, num_heads=H, eps=1e-5)
    out = jax.block_until_ready(out)

    ref = _reference(x, ln_w, ln_b, in_proj_w, in_proj_b, out_proj_w, out_proj_b,
                     H, eps=1e-5)
    # Tolerance covers the approximate (EUP) reciprocal in the deferred softmax
    # normalization; everything else is f32.
    np.testing.assert_allclose(np.asarray(out), np.asarray(ref), rtol=5e-3, atol=5e-3)

    print("KERNEL_OK")
</pallas_src>

<mosaic_0001>
module attributes {stable_mosaic.version = 11 : i64} {
  func.func @_mhsa_kernel(%arg0: i32, %arg1: memref<16x32xf32, #tpu.memory_space<vmem>>, %arg2: memref<1x32xf32, #tpu.memory_space<vmem>>, %arg3: memref<1x32xf32, #tpu.memory_space<vmem>>, %arg4: memref<32x96xf32, #tpu.memory_space<vmem>>, %arg5: memref<1x96xf32, #tpu.memory_space<vmem>>, %arg6: memref<32x32xf32, #tpu.memory_space<vmem>>, %arg7: memref<1x32xf32, #tpu.memory_space<vmem>>, %arg8: memref<16x32xf32, #tpu.memory_space<vmem>>) attributes {dimension_semantics = [#tpu.dimension_semantics<parallel>], iteration_bounds = array<i64: 1>, scalar_prefetch = 0 : i64, scratch_operands = 0 : i64, tpu.core_type = #tpu.core_type<tc>, window_params = [{transform_indices = @transform_0, window_bounds = array<i64: 16, 32>}, {pipeline_mode = #tpu.pipeline_mode<synchronous>, transform_indices = @transform_1, window_bounds = array<i64: 1, 32>}, {pipeline_mode = #tpu.pipeline_mode<synchronous>, transform_indices = @transform_2, window_bounds = array<i64: 1, 32>}, {pipeline_mode = #tpu.pipeline_mode<synchronous>, transform_indices = @transform_3, window_bounds = array<i64: 32, 96>}, {pipeline_mode = #tpu.pipeline_mode<synchronous>, transform_indices = @transform_4, window_bounds = array<i64: 1, 96>}, {pipeline_mode = #tpu.pipeline_mode<synchronous>, transform_indices = @transform_5, window_bounds = array<i64: 32, 32>}, {pipeline_mode = #tpu.pipeline_mode<synchronous>, transform_indices = @transform_6, window_bounds = array<i64: 1, 32>}, {transform_indices = @transform_7, window_bounds = array<i64: 16, 32>}]} {
    %c0 = arith.constant 0 : index
    %c0_0 = arith.constant 0 : index
    %0 = vector.load %arg1[%c0, %c0_0] : memref<16x32xf32, #tpu.memory_space<vmem>>, vector<16x32xf32>
    %cst = arith.constant dense<0.000000e+00> : vector<16xf32>
    %1 = vector.multi_reduction <add>, %0, %cst [1] : vector<16x32xf32> to vector<16xf32>
    %2 = vector.shape_cast %1 : vector<16xf32> to vector<16x1xf32>
    %cst_1 = arith.constant 3.200000e+01 : f32
    %3 = vector.broadcast %cst_1 : f32 to vector<16x1xf32>
    %4 = arith.divf %2, %3 : vector<16x1xf32>
    %5 = vector.broadcast %4 : vector<16x1xf32> to vector<16x32xf32>
    %6 = arith.subf %0, %5 : vector<16x32xf32>
    %7 = arith.mulf %6, %6 : vector<16x32xf32>
    %cst_2 = arith.constant dense<0.000000e+00> : vector<16xf32>
    %8 = vector.multi_reduction <add>, %7, %cst_2 [1] : vector<16x32xf32> to vector<16xf32>
    %9 = vector.shape_cast %8 : vector<16xf32> to vector<16x1xf32>
    %cst_3 = arith.constant 3.200000e+01 : f32
    %10 = vector.broadcast %cst_3 : f32 to vector<16x1xf32>
    %11 = arith.divf %9, %10 : vector<16x1xf32>
    %cst_4 = arith.constant 9.99999974E-6 : f32
    %12 = vector.broadcast %cst_4 : f32 to vector<16x1xf32>
    %13 = arith.addf %11, %12 : vector<16x1xf32>
    %14 = math.rsqrt %13 : vector<16x1xf32>
    %15 = vector.broadcast %14 : vector<16x1xf32> to vector<16x32xf32>
    %16 = arith.mulf %6, %15 : vector<16x32xf32>
    %c0_5 = arith.constant 0 : index
    %c0_6 = arith.constant 0 : index
    %17 = vector.load %arg2[%c0_5, %c0_6] : memref<1x32xf32, #tpu.memory_space<vmem>>, vector<1x32xf32>
    %18 = vector.shape_cast %17 : vector<1x32xf32> to vector<32xf32>
    %19 = vector.shape_cast %18 : vector<32xf32> to vector<1x32xf32>
    %20 = vector.broadcast %19 : vector<1x32xf32> to vector<16x32xf32>
    %21 = arith.mulf %16, %20 : vector<16x32xf32>
    %c0_7 = arith.constant 0 : index
    %c0_8 = arith.constant 0 : index
    %22 = vector.load %arg3[%c0_7, %c0_8] : memref<1x32xf32, #tpu.memory_space<vmem>>, vector<1x32xf32>
    %23 = vector.shape_cast %22 : vector<1x32xf32> to vector<32xf32>
    %24 = vector.shape_cast %23 : vector<32xf32> to vector<1x32xf32>
    %25 = vector.broadcast %24 : vector<1x32xf32> to vector<16x32xf32>
    %26 = arith.addf %21, %25 : vector<16x32xf32>
    %c0_9 = arith.constant 0 : index
    %c0_10 = arith.constant 0 : index
    %27 = vector.load %arg4[%c0_9, %c0_10] : memref<32x96xf32, #tpu.memory_space<vmem>>, vector<32x96xf32>
    %cst_11 = arith.constant dense<0.000000e+00> : vector<16x96xf32>
    %28 = tpu.matmul %26, %27, %cst_11 {dimension_numbers = #tpu.dot_dimension_numbers<[1], [0], [0], [1], [0, 0, 1, 1], [], []>} : vector<16x32xf32>, vector<32x96xf32>, vector<16x96xf32> -> vector<16x96xf32>
    %c0_12 = arith.constant 0 : index
    %c0_13 = arith.constant 0 : index
    %29 = vector.load %arg5[%c0_12, %c0_13] : memref<1x96xf32, #tpu.memory_space<vmem>>, vector<1x96xf32>
    %30 = vector.shape_cast %29 : vector<1x96xf32> to vector<96xf32>
    %31 = vector.shape_cast %30 : vector<96xf32> to vector<1x96xf32>
    %32 = vector.broadcast %31 : vector<1x96xf32> to vector<16x96xf32>
    %33 = arith.addf %28, %32 : vector<16x96xf32>
    %34 = vector.extract_strided_slice %33 {offsets = [0, 0], sizes = [16, 8], strides = [1, 1]} : vector<16x96xf32> to vector<16x8xf32>
    %35 = vector.shape_cast %34 : vector<16x8xf32> to vector<2x8x8xf32>
    %36 = vector.extract_strided_slice %33 {offsets = [0, 8], sizes = [16, 8], strides = [1, 1]} : vector<16x96xf32> to vector<16x8xf32>
    %37 = vector.shape_cast %36 : vector<16x8xf32> to vector<2x8x8xf32>
    %38 = vector.extract_strided_slice %33 {offsets = [0, 16], sizes = [16, 8], strides = [1, 1]} : vector<16x96xf32> to vector<16x8xf32>
    %39 = vector.shape_cast %38 : vector<16x8xf32> to vector<2x8x8xf32>
    %40 = vector.extract_strided_slice %33 {offsets = [0, 24], sizes = [16, 8], strides = [1, 1]} : vector<16x96xf32> to vector<16x8xf32>
    %41 = vector.shape_cast %40 : vector<16x8xf32> to vector<2x8x8xf32>
    %42 = tpu.concatenate %35, %37, %39, %41 in 0 : vector<2x8x8xf32>, vector<2x8x8xf32>, vector<2x8x8xf32>, vector<2x8x8xf32> -> vector<8x8x8xf32>
    %43 = vector.extract_strided_slice %33 {offsets = [0, 32], sizes = [16, 8], strides = [1, 1]} : vector<16x96xf32> to vector<16x8xf32>
    %44 = vector.shape_cast %43 : vector<16x8xf32> to vector<2x8x8xf32>
    %45 = vector.extract_strided_slice %33 {offsets = [0, 40], sizes = [16, 8], strides = [1, 1]} : vector<16x96xf32> to vector<16x8xf32>
    %46 = vector.shape_cast %45 : vector<16x8xf32> to vector<2x8x8xf32>
    %47 = vector.extract_strided_slice %33 {offsets = [0, 48], sizes = [16, 8], strides = [1, 1]} : vector<16x96xf32> to vector<16x8xf32>
    %48 = vector.shape_cast %47 : vector<16x8xf32> to vector<2x8x8xf32>
    %49 = vector.extract_strided_slice %33 {offsets = [0, 56], sizes = [16, 8], strides = [1, 1]} : vector<16x96xf32> to vector<16x8xf32>
    %50 = vector.shape_cast %49 : vector<16x8xf32> to vector<2x8x8xf32>
    %51 = tpu.concatenate %44, %46, %48, %50 in 0 : vector<2x8x8xf32>, vector<2x8x8xf32>, vector<2x8x8xf32>, vector<2x8x8xf32> -> vector<8x8x8xf32>
    %52 = vector.extract_strided_slice %33 {offsets = [0, 64], sizes = [16, 8], strides = [1, 1]} : vector<16x96xf32> to vector<16x8xf32>
    %53 = vector.shape_cast %52 : vector<16x8xf32> to vector<2x8x8xf32>
    %54 = vector.extract_strided_slice %33 {offsets = [0, 72], sizes = [16, 8], strides = [1, 1]} : vector<16x96xf32> to vector<16x8xf32>
    %55 = vector.shape_cast %54 : vector<16x8xf32> to vector<2x8x8xf32>
    %56 = vector.extract_strided_slice %33 {offsets = [0, 80], sizes = [16, 8], strides = [1, 1]} : vector<16x96xf32> to vector<16x8xf32>
    %57 = vector.shape_cast %56 : vector<16x8xf32> to vector<2x8x8xf32>
    %58 = vector.extract_strided_slice %33 {offsets = [0, 88], sizes = [16, 8], strides = [1, 1]} : vector<16x96xf32> to vector<16x8xf32>
    %59 = vector.shape_cast %58 : vector<16x8xf32> to vector<2x8x8xf32>
    %60 = tpu.concatenate %53, %55, %57, %59 in 0 : vector<2x8x8xf32>, vector<2x8x8xf32>, vector<2x8x8xf32>, vector<2x8x8xf32> -> vector<8x8x8xf32>
    "tpu.trace_start"() <{level = 10 : i32, message = "gqd,gkd->gqk"}> : () -> ()
    %cst_14 = arith.constant dense<0.000000e+00> : vector<8x8x8xf32>
    %61 = tpu.matmul %42, %51, %cst_14 {dimension_numbers = #tpu.dot_dimension_numbers<[2], [2], [1], [1], [0, 0, 0, 1, 1, 1], [0], [0]>} : vector<8x8x8xf32>, vector<8x8x8xf32>, vector<8x8x8xf32> -> vector<8x8x8xf32>
    "tpu.trace_stop"() : () -> ()
    %cst_15 = arith.constant dense<0xFF800000> : vector<8x8xf32>
    %62 = vector.multi_reduction <maximumf>, %61, %cst_15 [2] : vector<8x8x8xf32> to vector<8x8xf32>
    %63 = vector.shape_cast %62 : vector<8x8xf32> to vector<8x8x1xf32>
    %64 = vector.broadcast %63 : vector<8x8x1xf32> to vector<8x8x8xf32>
    %65 = arith.subf %61, %64 : vector<8x8x8xf32>
    %66 = math.exp %65 : vector<8x8x8xf32>
    %cst_16 = arith.constant dense<0.000000e+00> : vector<8x8xf32>
    %67 = vector.multi_reduction <add>, %66, %cst_16 [2] : vector<8x8x8xf32> to vector<8x8xf32>
    %68 = vector.shape_cast %67 : vector<8x8xf32> to vector<8x8x1xf32>
    "tpu.trace_start"() <{level = 10 : i32, message = "gqk,gkd->gqd"}> : () -> ()
    %cst_17 = arith.constant dense<0.000000e+00> : vector<8x8x8xf32>
    %69 = tpu.matmul %66, %60, %cst_17 {dimension_numbers = #tpu.dot_dimension_numbers<[2], [1], [1], [2], [0, 0, 0, 1, 1, 2], [0], [0]>} : vector<8x8x8xf32>, vector<8x8x8xf32>, vector<8x8x8xf32> -> vector<8x8x8xf32>
    "tpu.trace_stop"() : () -> ()
    %70 = tpu.reciprocal %68 {approx = true} : vector<8x8x1xf32> -> vector<8x8x1xf32>
    %71 = vector.broadcast %70 : vector<8x8x1xf32> to vector<8x8x8xf32>
    %72 = arith.mulf %69, %71 : vector<8x8x8xf32>
    %73 = vector.extract_strided_slice %72 {offsets = [0, 0, 0], sizes = [2, 8, 8], strides = [1, 1, 1]} : vector<8x8x8xf32> to vector<2x8x8xf32>
    %74 = vector.shape_cast %73 : vector<2x8x8xf32> to vector<16x8xf32>
    %75 = vector.extract_strided_slice %72 {offsets = [2, 0, 0], sizes = [2, 8, 8], strides = [1, 1, 1]} : vector<8x8x8xf32> to vector<2x8x8xf32>
    %76 = vector.shape_cast %75 : vector<2x8x8xf32> to vector<16x8xf32>
    %77 = vector.extract_strided_slice %72 {offsets = [4, 0, 0], sizes = [2, 8, 8], strides = [1, 1, 1]} : vector<8x8x8xf32> to vector<2x8x8xf32>
    %78 = vector.shape_cast %77 : vector<2x8x8xf32> to vector<16x8xf32>
    %79 = vector.extract_strided_slice %72 {offsets = [6, 0, 0], sizes = [2, 8, 8], strides = [1, 1, 1]} : vector<8x8x8xf32> to vector<2x8x8xf32>
    %80 = vector.shape_cast %79 : vector<2x8x8xf32> to vector<16x8xf32>
    %81 = tpu.concatenate %74, %76, %78, %80 in 1 : vector<16x8xf32>, vector<16x8xf32>, vector<16x8xf32>, vector<16x8xf32> -> vector<16x32xf32>
    %c0_18 = arith.constant 0 : index
    %c0_19 = arith.constant 0 : index
    %82 = vector.load %arg6[%c0_18, %c0_19] : memref<32x32xf32, #tpu.memory_space<vmem>>, vector<32x32xf32>
    %cst_20 = arith.constant dense<0.000000e+00> : vector<16x32xf32>
    %83 = tpu.matmul %81, %82, %cst_20 {dimension_numbers = #tpu.dot_dimension_numbers<[1], [0], [0], [1], [0, 0, 1, 1], [], []>} : vector<16x32xf32>, vector<32x32xf32>, vector<16x32xf32> -> vector<16x32xf32>
    %c0_21 = arith.constant 0 : index
    %c0_22 = arith.constant 0 : index
    %84 = vector.load %arg7[%c0_21, %c0_22] : memref<1x32xf32, #tpu.memory_space<vmem>>, vector<1x32xf32>
    %85 = vector.shape_cast %84 : vector<1x32xf32> to vector<32xf32>
    %86 = vector.shape_cast %85 : vector<32xf32> to vector<1x32xf32>
    %87 = vector.broadcast %86 : vector<1x32xf32> to vector<16x32xf32>
    %88 = arith.addf %83, %87 : vector<16x32xf32>
    %c0_23 = arith.constant 0 : index
    %c0_24 = arith.constant 0 : index
    %89 = vector.load %arg8[%c0_23, %c0_24] : memref<16x32xf32, #tpu.memory_space<vmem>>, vector<16x32xf32>
    tpu.vector_store %arg8[%c0_23, %c0_24], %88 {strides = array<i32>} : memref<16x32xf32, #tpu.memory_space<vmem>>, vector<16x32xf32>,
    return
  }
  func.func @transform_0(%arg0: i32) -> (i32, i32) {
    %c0_i32 = arith.constant 0 : i32
    %c0_i32_0 = arith.constant 0 : i32
    return %arg0, %c0_i32 : i32, i32
  }
  func.func @transform_1(%arg0: i32) -> (i32, i32) {
    %c0_i32 = arith.constant 0 : i32
    %c0_i32_0 = arith.constant 0 : i32
    %c0_i32_1 = arith.constant 0 : i32
    return %c0_i32, %c0_i32_0 : i32, i32
  }
  func.func @transform_2(%arg0: i32) -> (i32, i32) {
    %c0_i32 = arith.constant 0 : i32
    %c0_i32_0 = arith.constant 0 : i32
    %c0_i32_1 = arith.constant 0 : i32
    return %c0_i32, %c0_i32_0 : i32, i32
  }
  func.func @transform_3(%arg0: i32) -> (i32, i32) {
    %c0_i32 = arith.constant 0 : i32
    %c0_i32_0 = arith.constant 0 : i32
    %c0_i32_1 = arith.constant 0 : i32
    return %c0_i32, %c0_i32_0 : i32, i32
  }
  func.func @transform_4(%arg0: i32) -> (i32, i32) {
    %c0_i32 = arith.constant 0 : i32
    %c0_i32_0 = arith.constant 0 : i32
    %c0_i32_1 = arith.constant 0 : i32
    return %c0_i32, %c0_i32_0 : i32, i32
  }
  func.func @transform_5(%arg0: i32) -> (i32, i32) {
    %c0_i32 = arith.constant 0 : i32
    %c0_i32_0 = arith.constant 0 : i32
    %c0_i32_1 = arith.constant 0 : i32
    return %c0_i32, %c0_i32_0 : i32, i32
  }
  func.func @transform_6(%arg0: i32) -> (i32, i32) {
    %c0_i32 = arith.constant 0 : i32
    %c0_i32_0 = arith.constant 0 : i32
    %c0_i32_1 = arith.constant 0 : i32
    return %c0_i32, %c0_i32_0 : i32, i32
  }
  func.func @transform_7(%arg0: i32) -> (i32, i32) {
    %c0_i32 = arith.constant 0 : i32
    %c0_i32_0 = arith.constant 0 : i32
    return %arg0, %c0_i32 : i32, i32
  }
}

</mosaic_0001>

<bundles_post_ra>
// kernel: tpu_custom_call.1
= control target key start
LH: loop header
LB: loop body
LE: loop exit
PB: predicated region body
PF: predicated region fallthrough
CT: control target
= control target key end

     0   :  { %12 = vsyncpa [#allocation3], 0  ;;  %s2281_s0 = inlined_call_operand.hbm [shape: f32[16,32], index: 0, kind: input, shape index: {}]   ;;  %s2282_s1 = inlined_call_operand.vmem [shape: f32[1,32], index: 1, kind: input, shape index: {}]   ;;  %s2283_s2 = inlined_call_operand.vmem [shape: f32[1,32], index: 2, kind: input, shape index: {}]   ;;  %s2284_s3 = inlined_call_operand.hbm [shape: f32[32,96], index: 3, kind: input, shape index: {}]   ;;  %s2285_s4 = inlined_call_operand.vmem [shape: f32[1,96], index: 4, kind: input, shape index: {}]   ;;  %s2286_s5 = inlined_call_operand.hbm [shape: f32[32,32], index: 5, kind: input, shape index: {}]   ;;  %s2287_s6 = inlined_call_operand.vmem [shape: f32[1,32], index: 6, kind: input, shape index: {}]   ;;  %s2288_s7 = inlined_call_operand.hbm [shape: f32[16,32], index: 7, kind: output, shape index: {}]  }
   0x1   :  { %13 = vsyncpa [#allocation6], 0 }
   0x2   :  { %14 = vsyncpa [#allocation4], 0  ;;  %s2010_s24 = smov [#allocation5]   ;;  %s2011_s26 = smov [#allocation2]  }
   0x3   :  { %s36_s25 = sshll.u32 %s2010_s24, 4  ;;  %s20_s27 = sshll.u32 %s2011_s26, 4  ;;  %s37_s25 = int_to_ptr.vmem [resolvable:$true] %s36_s25  ;;  %s2065_s27 = int_to_ptr.vmem [resolvable:$true] %s20_s27 }
   0x4   :  { %s1916_s30 = scalar_lea.hbm %s2284_s3, 512 }
   0x5   :  { %p1917_p0 = scmp.ne.s32.totalorder %s2284_s3, %s1916_s30  ;;  %p1920_p1 = scmp.lt.u32.totalorder %s1916_s30, %s2284_s3 }
   0x7   :  { %p1922_p2 = pnand %p1920_p1, %p1917_p0 }
   0x9   :  { %1925 = shalt.err (!%p1922_p2)
}
   0xa   :  { %s1926_s12 = scalar_lea.vmem %s37_s25, 512  ;;  %p1931_p4 = scmp.lt.s32.totalorder %s37_s25, %s37_s25 }
   0xb   :  { %p1927_p3 = scmp.ne.s32.totalorder %s37_s25, %s1926_s12  ;;  %p1932_p5 = scmp.lt.s32.totalorder %s1926_s12, %s1926_s12 }
   0xd   :  { %p1933_p6 = por %p1932_p5, %p1931_p4 }
   0xf   :  { %p1934_p7 = pnand %p1933_p6, %p1927_p3 }
  0x11   :  { %1937 = shalt.err (!%p1934_p7)
}
  0x12   :  { %s2012_s13 = smov 128   ;;  %s2013_s14 = smov 8  }
  0x13   :  { %42 = dma.hbm_to_vmem [thread:$0]  %s2284_s3, 512, %s37_s25, [#allocation6], %s2012_s13, %s2012_s13, %s2013_s14  }
  0x14   :  { %s1938_s19 = scalar_lea.hbm %s2281_s0, 256 }
  0x15   :  { %p1939_p8 = scmp.ne.s32.totalorder %s2281_s0, %s1938_s19  ;;  %p1942_p9 = scmp.lt.u32.totalorder %s1938_s19, %s2281_s0 }
  0x17   :  { %p1944_p10 = pnand %p1942_p9, %p1939_p8 }
  0x19   :  { %1947 = shalt.err (!%p1944_p10)
}
  0x1a   :  { %s1948_s24 = scalar_lea.vmem %s2065_s27, 256  ;;  %p1953_p12 = scmp.lt.s32.totalorder %s2065_s27, %s2065_s27 }
  0x1b   :  { %p1949_p11 = scmp.ne.s32.totalorder %s2065_s27, %s1948_s24  ;;  %p1954_p13 = scmp.lt.s32.totalorder %s1948_s24, %s1948_s24 }
  0x1d   :  { %p1955_p0 = por %p1954_p13, %p1953_p12 }
  0x1f   :  { %p1956_p1 = pnand %p1955_p0, %p1949_p11 }
  0x21   :  { %1959 = shalt.err (!%p1956_p1)
}
  0x22   :  { %26 = dma.hbm_to_vmem [thread:$0]  %s2281_s0, 256, %s2065_s27, [#allocation3], %s2012_s13, %s2012_s13, %s2013_s14  }
  0x23   :  { %s2014_s26 = smov [#allocation7]   ;;  %s1960_s8 = scalar_lea.hbm %s2286_s5, 512 }
  0x24   :  { %s50_s28 = sshll.u32 %s2014_s26, 4  ;;  %p1961_p2 = scmp.ne.s32.totalorder %s2286_s5, %s1960_s8  ;;  %s51_s28 = int_to_ptr.vmem [resolvable:$true] %s50_s28 }
  0x25   :  { %p1964_p3 = scmp.lt.u32.totalorder %s1960_s8, %s2286_s5 }
  0x27   :  { %p1966_p4 = pnand %p1964_p3, %p1961_p2 }
  0x29   :  { %1969 = shalt.err (!%p1966_p4)
}
  0x2a   :  { %s1970_s15 = scalar_lea.vmem %s51_s28, 512  ;;  %p1975_p6 = scmp.lt.s32.totalorder %s51_s28, %s51_s28 }
  0x2b   :  { %p1971_p5 = scmp.ne.s32.totalorder %s51_s28, %s1970_s15  ;;  %p1976_p7 = scmp.lt.s32.totalorder %s1970_s15, %s1970_s15 }
  0x2d   :  { %p1977_p8 = por %p1976_p7, %p1975_p6 }
  0x2f   :  { %p1978_p9 = pnand %p1977_p8, %p1971_p5 }
  0x31   :  { %1981 = shalt.err (!%p1978_p9)
}
  0x32   :  { %56 = dma.hbm_to_vmem [thread:$0]  %s2286_s5, 512, %s51_s28, [#allocation6], %s2012_s13, %s2012_s13, %s2013_s14  }
  0x33   :  { %2004 = dma.done.wait [#allocation3], 256  }
  0x34   :  { %2005 = vsyncadd [#allocation3], 4294967040 }
  0x35   :  { %2006 = dma.done.wait [#allocation6], 1024  }
  0x36   :  { %2007 = vsyncadd [#allocation6], 4294966272  ;;  %vm70_vm0 = vcmask 261120   ;;  %v68_v0 = vld [vmem:[#allocation2] sm:$0xff]  ;;  %v69_v1 = vld [vmem:[#allocation2 + $0x8] sm:$0xff]  ;;  %v2015_v37 = vmov 0.0  }
  0x37   :  { %v71_v2 = vsel %vm70_vm0, %v68_v0, 0.0  ;;  %v74_v3 = vsel %vm70_vm0, %v69_v1, 0.0  ;;  %v116_v14 = vld [vmem:[#allocation5] sm:$0xff]  ;;  %v117_v15 = vld [vmem:[#allocation5 + $0x8] sm:$0xff]  ;;  %v118_v16 = vld [vmem:[#allocation5 + $0x10] sm:$0xff]  ;;  %1758 = vmatprep.subr.mxu1 %v2015_v37  ;;  %vm2016_vm1 = vmmov 0  }
  0x38   :  { %72 = vadd.xlane.f32.xlu0 %v71_v2  ;;  %v1849_v17 = vpack.c.bf16 %v117_v15, %v116_v14  ;;  %v119_v18 = vld [vmem:[#allocation5 + $0x18] sm:$0xff]  ;;  %v1671_v27 = vld [vmem:[%s2282_s1] ss:$0 sm:$0xff]  ;;  %1760 = vmatprep.mubr.msk.f32.mxu1 %vm2016_vm1, %v2015_v37  ;;  %s2017_s1 = smov 120   ;;  %s2020_s21 = smov 96   ;;  %vm224_vm2 = vcmask 64512  }
  0x39   :  { %v1853_v19 = vpack.c.bf16 %v119_v18, %v118_v16  ;;  %v1672_v29 = vld [vmem:[%s2283_s2] ss:$0 sm:$0xff]  ;;  %s2018_s2 = smov 112   ;;  %s2021_s22 = smov 64   ;;  %vm1553_vm3 = vcmask 130048   ;;  %vm1556_vm4 = vcmask 195584  }
  0x3a   :  { %1850 = vmatprep.subr.bf16.mxu0 %v1849_v17  ;;  %v1673_v36 = vld [vmem:[%s2285_s4] ss:$0 sm:$0xff]  ;;  %s2019_s4 = smov 104   ;;  %s2022_s23 = smov 16  }
  0x3b   :  { %1852 = vmatpush3.bf16.msra.mxu0 %v1849_v17  ;;  %s2023_s24 = smov 24   ;;  %s2024_s26 = smov [#allocation8]  }
  0x3c   :  { %75 = vadd.xlane.f32.xlu0 %v74_v3  ;;  %1854 = vmatprep.subr.bf16.mxu0 %v1853_v19  ;;  %s1658_s28 = sshll.u32 %s2024_s26, 4  ;;  %s1659_s28 = int_to_ptr.vmem [resolvable:$true] %s1658_s28 }
  0x3d   :  { %s1982_s29 = scalar_lea.vmem %s1659_s28, 256  ;;  %p1987_p11 = scmp.lt.s32.totalorder %s1659_s28, %s1659_s28 }
  0x3e   :  { %p1983_p10 = scmp.ne.s32.totalorder %s1659_s28, %s1982_s29  ;;  %p1988_p12 = scmp.lt.s32.totalorder %s1982_s29, %s1982_s29 }
  0x3f   :  { %1856 = vmatpush3.bf16.msra.mxu0 %v1853_v19 }
  0x40   :  { %1778 = vmatprep.subr.mxu0 %v2015_v37  ;;  %p1989_p13 = por %p1988_p12, %p1987_p11 }
  0x42   :  { %p1990_p0 = pnand %p1989_p13, %p1983_p10 }
  0xc5   :  { %v73_v4 = vpop.xlane.xlu0 %72 }
  0xc6   :  { %v78_v5 = vmul.f32 0.03125, %v73_v4 }
  0xc8   :  { %v80_v6 = vsub.f32 %v68_v0, %v78_v5 }
  0xc9   :  { %v76_v7 = vpop.xlane.xlu0 %75 }
  0xca   :  { %v79_v8 = vmul.f32 0.03125, %v76_v7  ;;  %v82_v9 = vmul.f32 %v80_v6, %v80_v6 }
  0xcc   :  { %v81_v10 = vsub.f32 %v69_v1, %v79_v8  ;;  %v84_v11 = vsel %vm70_vm0, %v82_v9, 0.0 }
  0xcd   :  { %85 = vadd.xlane.f32.xlu1 %v84_v11 }
  0xce   :  { %v83_v12 = vmul.f32 %v81_v10, %v81_v10 }
  0xd0   :  { %v87_v13 = vsel %vm70_vm0, %v83_v12, 0.0 }
  0xd1   :  { %88 = vadd.xlane.f32.xlu1 %v87_v13 }
 0x15a   :  { %v86_v20 = vpop.xlane.xlu1 %85 }
 0x15b   :  { %v90_v21 = vmul.f32 0.03125, %v86_v20 }
 0x15d   :  { %v92_v22 = vadd.f32 1e-05, %v90_v21 }
 0x15e   :  { %v89_v23 = vpop.xlane.xlu1 %88 }
 0x15f   :  { %1880 = vrsqrt.f32 %v92_v22  ;;  %v91_v24 = vmul.f32 0.03125, %v89_v23 }
 0x161   :  { %v93_v25 = vadd.f32 1e-05, %v91_v24 }
 0x163   :  { %1882 = vrsqrt.f32 %v93_v25 }
 0x169   :  { %v1881_v26 = vpop.eup %1880 }
 0x16a   :  { %v96_v28 = vmul.f32 %v1881_v26, %v80_v6 }
 0x16c   :  { %v105_v30 = vmul.f32 %v1671_v27, %v96_v28 }
 0x16d   :  { %v1883_v31 = vpop.eup %1882 }
 0x16e   :  { %v97_v32 = vmul.f32 %v1883_v31, %v81_v10  ;;  %v114_v33 = vadd.f32 %v1672_v29, %v105_v30 }
 0x170   :  { %v106_v34 = vmul.f32 %v1671_v27, %v97_v32  ;;  %1755 = vmatprep.mubr.msk.f32.mxu0 %vm70_vm0, %v114_v33 }
 0x172   :  { %v115_v35 = vadd.f32 %v1672_v29, %v106_v34 }
 0x174   :  { %1756 = vmatmul.mubr.msk.f32.vlgmr.msra.gmra.mrb[0].mxu0 %vm70_vm0, %v115_v35 }
 0x175   :  { %1780 = vmatprep.mubr.msk.f32.mxu0 %vm2016_vm1, %v2015_v37 }
 0x247   :  { %v1757_v38 = vpop.f32.mrb[0].mxu0 }
 0x248   :  { %v205_v39 = vadd.f32 %v1757_v38, %v1673_v36  ;;  %v199_v40 = vpop.f32.mrb[1].mxu0 }
 0x249   :  { %v200_v41 = vadd.f32 %v1673_v36, %v199_v40 }
 0x24a   :  { %212 = vrot.lane.b32.xlu1 %v205_v39, %s2017_s1 }
 0x24b   :  { %210 = vrot.lane.b32.xlu0 %v200_v41, %s2017_s1 }
 0x24e   :  { %214 = vrot.lane.b32.xlu1 %v200_v41, %s2018_s2 }
 0x24f   :  { %218 = vrot.lane.b32.xlu0 %v200_v41, %s2019_s4 }
 0x252   :  { %216 = vrot.lane.b32.xlu1 %v205_v39, %s2018_s2 }
 0x253   :  { %222 = vrot.lane.b32.xlu0 %v200_v41, %s2020_s21 }
 0x256   :  { %220 = vrot.lane.b32.xlu1 %v205_v39, %s2019_s4 }
 0x25a   :  { %299 = vrot.lane.b32.xlu1 %v205_v39, %s2020_s21 }
 0x2bc   :  { %v213_v42 = vpop.permute.xlu1 %212 }
 0x2bd   :  { %451 = vrot.lane.b32.xlu1 %v213_v42, %s2020_s21  ;;  %v211_v43 = vpop.permute.xlu0 %210 }
 0x2be   :  { %375 = vrot.lane.b32.xlu0 %v211_v43, %s2020_s21 }
 0x2c0   :  { %v215_v44 = vpop.permute.xlu1 %214 }
 0x2c1   :  { %v2138_v45 = vpop.permute.xlu0 %218 }
 0x2c2   :  { %527 = vrot.lane.b32.xlu0 %v215_v44, %s2020_s21 }
 0x2c4   :  { %v217_v46 = vpop.permute.xlu1 %216 }
 0x2c5   :  { %603 = vrot.lane.b32.xlu1 %v217_v46, %s2020_s21  ;;  %v223_v47 = vpop.permute.xlu0 %222 }
 0x2c6   :  { %679 = vrot.lane.b32.xlu0 %v2138_v45, %s2020_s21  ;;  %1759 = vmatpush3.xpose.msk.msra.mxu1 %vm224_vm2, %v223_v47 }
 0x2c7   :  { %1763 = vmatprep.subr.mxu1 %v2015_v37 }
 0x2c8   :  { %v2143_v48 = vpop.permute.xlu1 %220 }
 0x2c9   :  { %755 = vrot.lane.b32.xlu1 %v2143_v48, %s2020_s21  ;;  %1761 = vmatmul.mubr.msk.f32.vlgmr.msra.gmra.mrb[0].mxu1 %vm224_vm2, %v200_v41 }
 0x2ca   :  { %903 = vrot.lane.b32.xlu0 %v200_v41, %s2021_s22  ;;  %1765 = vmatprep.mubr.msk.f32.mxu1 %vm2016_vm1, %v2015_v37 }
 0x2cc   :  { %v300_v49 = vpop.permute.xlu1 %299 }
 0x2cd   :  { %979 = vrot.lane.b32.xlu1 %v205_v39, %s2021_s22  ;;  %1764 = vmatpush3.xpose.msk.msra.mxu1 %vm224_vm2, %v300_v49 }
 0x2ce   :  { %1207 = vrot.lane.b32.xlu0 %v215_v44, %s2021_s22  ;;  %1768 = vmatprep.subr.mxu1 %v2015_v37 }
 0x2d0   :  { %1766 = vmatmul.mubr.msk.f32.vlgmr.msra.gmra.mrb[2].mxu1 %vm224_vm2, %v205_v39 }
 0x2d1   :  { %1131 = vrot.lane.b32.xlu1 %v213_v42, %s2021_s22  ;;  %1770 = vmatprep.mubr.msk.f32.mxu1 %vm2016_vm1, %v2015_v37 }
 0x2d5   :  { %1283 = vrot.lane.b32.xlu1 %v217_v46, %s2021_s22 }
 0x2d9   :  { %1055 = vrot.lane.b32.xlu1 %v211_v43, %s2021_s22 }
 0x32f   :  { %v452_v51 = vpop.permute.xlu1 %451 }
 0x330   :  { %v376_v50 = vpop.permute.xlu0 %375 }
 0x331   :  { %1769 = vmatpush3.xpose.msk.msra.mxu1 %vm224_vm2, %v376_v50 }
 0x332   :  { %1773 = vmatprep.subr.mxu1 %v2015_v37 }
 0x334   :  { %1771 = vmatmul.mubr.msk.f32.vlgmr.msra.gmra.mrb[4].mxu1 %vm224_vm2, %v211_v43  ;;  %v528_v52 = vpop.permute.xlu0 %527 }
 0x335   :  { %1774 = vmatpush3.xpose.msk.msra.mxu1 %vm224_vm2, %v452_v51  ;;  %1779 = vmatpush3.xpose.msk.msra.mxu0 %vm224_vm2, %v528_v52 }
 0x336   :  { %1775 = vmatprep.mubr.msk.f32.mxu1 %vm2016_vm1, %v2015_v37  ;;  %1783 = vmatprep.subr.mxu1 %v2015_v37 }
 0x337   :  { %v604_v53 = vpop.permute.xlu1 %603  ;;  %1788 = vmatprep.subr.mxu0 %v2015_v37 }
 0x338   :  { %1776 = vmatmul.mubr.msk.f32.vlgmr.msra.gmra.mrb[6].mxu1 %vm224_vm2, %v213_v42  ;;  %1781 = vmatmul.mubr.msk.f32.vlgmr.msra.gmra.mrb[2].mxu0 %vm224_vm2, %v215_v44  ;;  %v680_v54 = vpop.permute.xlu0 %679 }
 0x339   :  { %1784 = vmatpush3.xpose.msk.msra.mxu1 %vm224_vm2, %v604_v53  ;;  %1789 = vmatpush3.xpose.msk.msra.mxu0 %vm224_vm2, %v680_v54 }
 0x33a   :  { %1785 = vmatprep.mubr.msk.f32.mxu1 %vm2016_vm1, %v2015_v37  ;;  %1790 = vmatprep.mubr.msk.f32.mxu0 %vm2016_vm1, %v2015_v37 }
 0x33b   :  { %v756_v55 = vpop.permute.xlu1 %755  ;;  %1793 = vmatprep.subr.mxu1 %v2015_v37  ;;  %1798 = vmatprep.subr.mxu0 %v2015_v37 }
 0x33c   :  { %1786 = vmatmul.mubr.msk.f32.vlgmr.msra.gmra.mrb[8].mxu1 %vm224_vm2, %v217_v46  ;;  %1791 = vmatmul.mubr.msk.f32.vlgmr.msra.gmra.mrb[4].mxu0 %vm224_vm2, %v2138_v45  ;;  %v904_v56 = vpop.permute.xlu0 %903 }
 0x33d   :  { %1794 = vmatpush3.xpose.msk.msra.mxu1 %vm224_vm2, %v756_v55  ;;  %1799 = vmatpush3.msra.mxu0 %v904_v56 }
 0x33e   :  { %1795 = vmatprep.mubr.msk.f32.mxu1 %vm2016_vm1, %v2015_v37  ;;  %1803 = vmatprep.subr.mxu1 %v2015_v37 }
 0x33f   :  { %v980_v57 = vpop.permute.xlu1 %979  ;;  %1800 = vmatprep.mubr.msk.f32.mxu0 %vm2016_vm1, %v2015_v37  ;;  %1808 = vmatprep.subr.mxu0 %v2015_v37 }
 0x340   :  { %1796 = vmatmul.mubr.msk.f32.vlgmr.msra.gmra.mrb[10].mxu1 %vm224_vm2, %v2143_v48  ;;  %v1208_v19 = vpop.permute.xlu0 %1207 }
 0x341   :  { %1804 = vmatpush3.msra.mxu1 %v980_v57  ;;  %1805 = vmatprep.mubr.msk.f32.mxu1 %vm2016_vm1, %v2015_v37 }
 0x342   :  { %1813 = vmatprep.subr.mxu1 %v2015_v37 }
 0x343   :  { %v1132_v18 = vpop.permute.xlu1 %1131 }
 0x347   :  { %v2204_v20 = vpop.permute.xlu1 %1283 }
 0x34b   :  { %v1056_v23 = vpop.permute.xlu1 %1055 }
 0x39c   :  { %v295_v58 = vpop.f32.mrb[0].mxu1 }
 0x39d   :  { %v1762_v59 = vpop.f32.mrb[1].mxu1  ;;  %v831_v60 = vsel %vm224_vm2, %v295_v58, -inf }
 0x39e   :  { %832 = vmax.xlane.f32.xlu0 %v831_v60 }
 0x3a3   :  { %v371_v61 = vpop.f32.mrb[2].mxu1 }
 0x3a4   :  { %v1767_v62 = vpop.f32.mrb[3].mxu1  ;;  %v834_v63 = vsel %vm224_vm2, %v371_v61, -inf }
 0x3a5   :  { %835 = vmax.xlane.f32.xlu1 %v834_v63 }
 0x407   :  { %v447_v0 = vpop.f32.mrb[4].mxu1 }
 0x408   :  { %v1772_v1 = vpop.f32.mrb[5].mxu1  ;;  %v837_v2 = vsel %vm224_vm2, %v447_v0, -inf }
 0x409   :  { %838 = vmax.xlane.f32.xlu0 %v837_v2 }
 0x40b   :  { %v523_v3 = vpop.f32.mrb[6].mxu1  ;;  %v599_v4 = vpop.f32.mrb[2].mxu0 }
 0x40c   :  { %v1777_v5 = vpop.f32.mrb[7].mxu1  ;;  %v1782_v6 = vpop.f32.mrb[3].mxu0  ;;  %v843_v7 = vsel %vm224_vm2, %v599_v4, -inf  ;;  %v840_v13 = vsel %vm224_vm2, %v523_v3, -inf }
 0x40d   :  { %844 = vmax.xlane.f32.xlu0 %v843_v7 }
 0x40f   :  { %v675_v8 = vpop.f32.mrb[8].mxu1  ;;  %v751_v9 = vpop.f32.mrb[4].mxu0 }
 0x410   :  { %v1787_v10 = vpop.f32.mrb[9].mxu1  ;;  %v1792_v11 = vpop.f32.mrb[5].mxu0  ;;  %v846_v12 = vsel %vm224_vm2, %v675_v8, -inf  ;;  %v849_v17 = vsel %vm224_vm2, %v751_v9, -inf }
 0x411   :  { %847 = vmax.xlane.f32.xlu1 %v846_v12  ;;  %841 = vmax.xlane.f32.xlu0 %v840_v13  ;;  %v1559_v13 = vld [vmem:[#allocation7] sm:$0xff] }
 0x413   :  { %v827_v14 = vpop.f32.mrb[10].mxu1 }
 0x414   :  { %v1797_v15 = vpop.f32.mrb[11].mxu1  ;;  %v852_v16 = vsel %vm224_vm2, %v827_v14, -inf }
 0x415   :  { %853 = vmax.xlane.f32.xlu1 %v852_v16  ;;  %850 = vmax.xlane.f32.xlu0 %v849_v17 }
 0x426   :  { %1435 = vrot.lane.b32.xlu1 %v2143_v48, %s2021_s22 }
 0x42b   :  { %1359 = vrot.lane.b32.xlu0 %v2138_v45, %s2021_s22  ;;  %v833_v21 = vpop.xlane.xlu0 %832 }
 0x42c   :  { %v855_v22 = vsub.f32 %v295_v58, %v833_v21 }
 0x42e   :  { %v863_v24 = vmul.f32 1.442695, %v855_v22 }
 0x430   :  { %1884 = vpow2.f32 %v863_v24 }
 0x432   :  { %v836_v25 = vpop.xlane.xlu1 %835 }
 0x433   :  { %v856_v26 = vsub.f32 %v371_v61, %v836_v25 }
 0x435   :  { %v865_v27 = vmul.f32 1.442695, %v856_v26 }
 0x437   :  { %1886 = vpow2.f32 %v865_v27 }
 0x43a   :  { %v2208_v28 = vpop.eup %1884 }
 0x43b   :  { %1801 = vmatmul.mubr.msk.f32.vlgmr.msra.gmra.mrb[6].mxu0 %vm224_vm2, %v2208_v28 }
 0x43c   :  { %1809 = vmatpush3.msra.mxu0 %v1056_v23  ;;  %1810 = vmatprep.mubr.msk.f32.mxu0 %vm2016_vm1, %v2015_v37 }
 0x43d   :  { %1818 = vmatprep.subr.mxu0 %v2015_v37 }
 0x441   :  { %v2215_v29 = vpop.eup %1886 }
 0x442   :  { %1806 = vmatmul.mubr.msk.f32.vlgmr.msra.gmra.mrb[12].mxu1 %vm224_vm2, %v2215_v29  ;;  %v882_v63 = vsel %vm224_vm2, %v2215_v29, 0.0 }
 0x443   :  { %1814 = vmatpush3.msra.mxu1 %v1132_v18  ;;  %1815 = vmatprep.mubr.msk.f32.mxu1 %vm2016_vm1, %v2015_v37  ;;  %v1561_v18 = vld [vmem:[#allocation7 + $0x10] sm:$0xff] }
 0x444   :  { %1823 = vmatprep.subr.mxu1 %v2015_v37 }
 0x496   :  { %v839_v30 = vpop.xlane.xlu0 %838 }
 0x497   :  { %v857_v31 = vsub.f32 %v447_v0, %v839_v30  ;;  %v879_v0 = vsel %vm224_vm2, %v2208_v28, 0.0 }
 0x499   :  { %v867_v32 = vmul.f32 1.442695, %v857_v31 }
 0x49a   :  { %v845_v33 = vpop.xlane.xlu0 %844 }
 0x49b   :  { %1888 = vpow2.f32 %v867_v32  ;;  %v859_v34 = vsub.f32 %v599_v4, %v845_v33 }
 0x49d   :  { %v871_v35 = vmul.f32 1.442695, %v859_v34 }
 0x49e   :  { %v848_v36 = vpop.xlane.xlu1 %847  ;;  %v842_v38 = vpop.xlane.xlu0 %841 }
 0x49f   :  { %1890 = vpow2.f32 %v871_v35  ;;  %v860_v39 = vsub.f32 %v675_v8, %v848_v36  ;;  %v858_v40 = vsub.f32 %v523_v3, %v842_v38 }
 0x4a1   :  { %v873_v41 = vmul.f32 1.442695, %v860_v39  ;;  %v869_v42 = vmul.f32 1.442695, %v858_v40 }
 0x4a2   :  { %v854_v43 = vpop.xlane.xlu1 %853  ;;  %v851_v44 = vpop.xlane.xlu0 %850 }
 0x4a3   :  { %1892 = vpow2.f32 %v873_v41  ;;  %v862_v45 = vsub.f32 %v827_v14, %v854_v43  ;;  %v861_v46 = vsub.f32 %v751_v9, %v851_v44  ;;  %v1560_v14 = vld [vmem:[#allocation7 + $0x8] sm:$0xff] }
 0x4a4   :  { %1894 = vpow2.f32 %v869_v42  ;;  %v1857_v15 = vpack.c.bf16 %v1560_v14, %v1559_v13 }
 0x4a5   :  { %v1889_v47 = vpop.eup %1888  ;;  %v877_v48 = vmul.f32 1.442695, %v862_v45  ;;  %v875_v49 = vmul.f32 1.442695, %v861_v46 }
 0x4a6   :  { %1811 = vmatmul.mubr.msk.f32.vlgmr.msra.gmra.mrb[8].mxu0 %vm224_vm2, %v1889_v47  ;;  %v885_v50 = vsel %vm224_vm2, %v1889_v47, 0.0  ;;  %v1360_v52 = vpop.permute.xlu0 %1359  ;;  %v1436_v61 = vpop.permute.xlu1 %1435 }
 0x4a7   :  { %1896 = vpow2.f32 %v877_v48  ;;  %1819 = vmatpush3.msra.mxu0 %v1208_v19  ;;  %886 = vadd.xlane.f32.xlu0 %v885_v50  ;;  %v1562_v19 = vld [vmem:[#allocation7 + $0x18] sm:$0xff] }
 0x4a8   :  { %1898 = vpow2.f32 %v875_v49  ;;  %1820 = vmatprep.mubr.msk.f32.mxu0 %vm2016_vm1, %v2015_v37  ;;  %1828 = vmatprep.subr.mxu0 %v2015_v37 }
 0x4a9   :  { %v1891_v51 = vpop.eup %1890 }
 0x4aa   :  { %1821 = vmatmul.mubr.msk.f32.vlgmr.msra.gmra.mrb[10].mxu0 %vm224_vm2, %v1891_v51  ;;  %v891_v53 = vsel %vm224_vm2, %v1891_v51, 0.0 }
 0x4ab   :  { %1829 = vmatpush3.msra.mxu0 %v1360_v52  ;;  %892 = vadd.xlane.f32.xlu0 %v891_v53 }
 0x4ac   :  { %1830 = vmatprep.mubr.msk.f32.mxu0 %vm2016_vm1, %v2015_v37  ;;  %1858 = vmatprep.subr.bf16.mxu0 %v1857_v15 }
 0x4ad   :  { %v1893_v54 = vpop.eup %1892 }
 0x4ae   :  { %v1895_v55 = vpop.eup %1894  ;;  %v894_v56 = vsel %vm224_vm2, %v1893_v54, 0.0 }
 0x4af   :  { %1816 = vmatmul.mubr.msk.f32.vlgmr.msra.gmra.mrb[14].mxu1 %vm224_vm2, %v1895_v55  ;;  %895 = vadd.xlane.f32.xlu0 %v894_v56  ;;  %v888_v57 = vsel %vm224_vm2, %v1895_v55, 0.0 }
 0x4b0   :  { %1824 = vmatpush3.msra.mxu1 %v2204_v20  ;;  %889 = vadd.xlane.f32.xlu1 %v888_v57  ;;  %v1861_v20 = vpack.c.bf16 %v1562_v19, %v1561_v18 }
 0x4b1   :  { %v1897_v58 = vpop.eup %1896  ;;  %1825 = vmatprep.mubr.msk.f32.mxu1 %vm2016_vm1, %v2015_v37  ;;  %1833 = vmatprep.subr.mxu1 %v2015_v37 }
 0x4b2   :  { %v1899_v59 = vpop.eup %1898  ;;  %v900_v60 = vsel %vm224_vm2, %v1897_v58, 0.0 }
 0x4b3   :  { %1826 = vmatmul.mubr.msk.f32.vlgmr.msra.gmra.mrb[16].mxu1 %vm224_vm2, %v1893_v54  ;;  %1831 = vmatmul.mubr.msk.f32.vlgmr.msra.gmra.mrb[12].mxu0 %vm224_vm2, %v1899_v59  ;;  %v897_v62 = vsel %vm224_vm2, %v1899_v59, 0.0  ;;  %v1700_v59 = vld [vmem:[%s2287_s6] ss:$0 sm:$0xff] }
 0x4b4   :  { %1834 = vmatpush3.msra.mxu1 %v1436_v61  ;;  %901 = vadd.xlane.f32.xlu1 %v900_v60 }
 0x4b5   :  { %898 = vadd.xlane.f32.xlu0 %v897_v62  ;;  %1835 = vmatprep.mubr.msk.f32.mxu1 %vm2016_vm1, %v2015_v37 }
 0x4b6   :  { %1860 = vmatpush3.bf16.msra.mxu0 %v1857_v15 }
 0x4b7   :  { %1836 = vmatmul.mubr.msk.f32.vlgmr.msra.gmra.mrb[18].mxu1 %vm224_vm2, %v1897_v58  ;;  %1862 = vmatprep.subr.bf16.mxu0 %v1861_v20 }
 0x4b8   :  { %883 = vadd.xlane.f32.xlu1 %v882_v63 }
 0x4b9   :  { %880 = vadd.xlane.f32.xlu0 %v879_v0 }
 0x4ba   :  { %1864 = vmatpush3.bf16.msra.mxu0 %v1861_v20 }
 0x50e   :  { %v2249_v1 = vpop.f32.mrb[6].mxu0 }
 0x50f   :  { %v1802_v2 = vpop.f32.mrb[7].mxu0 }
 0x515   :  { %v2251_v3 = vpop.f32.mrb[12].mxu1 }
 0x516   :  { %v1807_v4 = vpop.f32.mrb[13].mxu1 }
 0x534   :  { %v887_v5 = vpop.xlane.xlu0 %886 }
 0x535   :  { %1900 = vrcp.f32 %v887_v5 }
 0x538   :  { %v893_v6 = vpop.xlane.xlu0 %892 }
 0x53c   :  { %v896_v37 = vpop.xlane.xlu0 %895 }
 0x53d   :  { %v890_v7 = vpop.xlane.xlu1 %889 }
 0x53e   :  { %1902 = vrcp.f32 %v890_v7 }
 0x53f   :  { %v1901_v8 = vpop.eup %1900  ;;  %1904 = vrcp.f32 %v893_v6 }
 0x541   :  { %v902_v21 = vpop.xlane.xlu1 %901 }
 0x542   :  { %v899_v9 = vpop.xlane.xlu0 %898 }
 0x543   :  { %1906 = vrcp.f32 %v899_v9 }
 0x544   :  { %1908 = vrcp.f32 %v896_v37 }
 0x545   :  { %1910 = vrcp.f32 %v902_v21  ;;  %v884_v42 = vpop.xlane.xlu1 %883 }
 0x546   :  { %v881_v41 = vpop.xlane.xlu0 %880 }
 0x547   :  { %1912 = vrcp.f32 %v881_v41 }
 0x548   :  { %v1903_v22 = vpop.eup %1902  ;;  %1914 = vrcp.f32 %v884_v42 }
 0x549   :  { %v1905_v26 = vpop.eup %1904 }
 0x54d   :  { %v1907_v27 = vpop.eup %1906 }
 0x54e   :  { %v1909_v34 = vpop.eup %1908 }
 0x54f   :  { %v1911_v39 = vpop.eup %1910 }
 0x551   :  { %v1913_v43 = vpop.eup %1912 }
 0x552   :  { %v1519_v46 = vmul.f32 %v1913_v43, %v2249_v1  ;;  %v1915_v51 = vpop.eup %1914 }
 0x553   :  { %v1520_v54 = vmul.f32 %v1915_v51, %v2251_v3 }
 0x579   :  { %v1127_v10 = vpop.f32.mrb[8].mxu0 }
 0x57a   :  { %v1521_v11 = vmul.f32 %v1901_v8, %v1127_v10  ;;  %v1812_v12 = vpop.f32.mrb[9].mxu0 }
 0x57c   :  { %1529 = vrot.lane.b32.xlu0 %v1521_v11, %s2013_s14 }
 0x57d   :  { %v1279_v16 = vpop.f32.mrb[10].mxu0 }
 0x57e   :  { %v1822_v17 = vpop.f32.mrb[11].mxu0  ;;  %v1523_v30 = vmul.f32 %v1905_v26, %v1279_v16 }
 0x582   :  { %v1203_v23 = vpop.f32.mrb[14].mxu1 }
 0x583   :  { %v1522_v24 = vmul.f32 %v1903_v22, %v1203_v23  ;;  %v1817_v25 = vpop.f32.mrb[15].mxu1 }
 0x585   :  { %1531 = vrot.lane.b32.xlu1 %v1522_v24, %s2013_s14 }
 0x586   :  { %v1355_v28 = vpop.f32.mrb[16].mxu1  ;;  %v1431_v29 = vpop.f32.mrb[12].mxu0 }
 0x587   :  { %v1525_v31 = vmul.f32 %v1907_v27, %v1431_v29  ;;  %v1827_v32 = vpop.f32.mrb[17].mxu1  ;;  %v1832_v33 = vpop.f32.mrb[13].mxu0  ;;  %v1524_v36 = vmul.f32 %v1909_v34, %v1355_v28 }
 0x589   :  { %1537 = vrot.lane.b32.xlu1 %v1523_v30, %s2022_s23  ;;  %1545 = vrot.lane.b32.xlu0 %v1525_v31, %s2023_s24 }
 0x58a   :  { %v1507_v35 = vpop.f32.mrb[18].mxu1 }
 0x58b   :  { %v1837_v38 = vpop.f32.mrb[19].mxu1  ;;  %v1526_v40 = vmul.f32 %v1911_v39, %v1507_v35 }
 0x58d   :  { %1539 = vrot.lane.b32.xlu1 %v1524_v36, %s2022_s23 }
 0x591   :  { %1547 = vrot.lane.b32.xlu1 %v1526_v40, %s2023_s24 }
 0x5ee   :  { %v1530_v44 = vpop.permute.xlu0 %1529 }
 0x5ef   :  { %v1551_v47 = vsel %vm224_vm2, %v1519_v46, %v1530_v44 }
 0x5f7   :  { %v1532_v45 = vpop.permute.xlu1 %1531 }
 0x5f8   :  { %v1552_v55 = vsel %vm224_vm2, %v1520_v54, %v1532_v45 }
 0x5fb   :  { %v1538_v48 = vpop.permute.xlu1 %1537  ;;  %v1546_v49 = vpop.permute.xlu0 %1545 }
 0x5fc   :  { %v1554_v50 = vsel %vm1553_vm3, %v1551_v47, %v1538_v48 }
 0x5fd   :  { %v1557_v52 = vsel %vm1556_vm4, %v1554_v50, %v1546_v49 }
 0x5fe   :  { %1846 = vmatprep.mubr.msk.f32.mxu0 %vm70_vm0, %v1557_v52 }
 0x5ff   :  { %v1540_v53 = vpop.permute.xlu1 %1539 }
 0x600   :  { %v1555_v56 = vsel %vm1553_vm3, %v1552_v55, %v1540_v53 }
 0x603   :  { %v1548_v57 = vpop.permute.xlu1 %1547 }
 0x604   :  { %v1558_v58 = vsel %vm1556_vm4, %v1555_v56, %v1548_v57 }
 0x605   :  { %1847 = vmatmul.mubr.msk.f32.vlgmr.msra.gmra.mrb[14].mxu0 %vm70_vm0, %v1558_v58 }
 0x6d8   :  { %v1848_v60 = vpop.f32.mrb[14].mxu0 }
 0x6d9   :  { %v1648_v61 = vadd.f32 %v1848_v60, %v1700_v59  ;;  %v1642_v62 = vpop.f32.mrb[15].mxu0 }
 0x6da   :  { %v1643_v63 = vadd.f32 %v1700_v59, %v1642_v62 }
 0x6db   :  { %1652 = vst.msk [vmem:[#allocation8 + $0x8] sm:$0xff] %vm70_vm0, %v1648_v61 }
 0x6dc   :  { %1651 = vst.msk [vmem:[#allocation8] sm:$0xff] %vm70_vm0, %v1643_v63 }
 0x6dd   :  { %1993 = shalt.err (!%p1990_p0)
}
 0x6de   :  { %s1994_s8 = scalar_lea.hbm %s2288_s7, 256 }
 0x6df   :  { %p1995_p1 = scmp.ne.s32.totalorder %s2288_s7, %s1994_s8  ;;  %p1998_p2 = scmp.lt.u32.totalorder %s1994_s8, %s2288_s7 }
 0x6e1   :  { %p2000_p3 = pnand %p1998_p2, %p1995_p1 }
 0x6e3   :  { %2003 = shalt.err (!%p2000_p3)
}
 0x6e4   :  { %1664 = dma.vmem_to_hbm [thread:$0]  %s1659_s28, 256, %s2288_s7, [#allocation4], %s2012_s13, %s2012_s13, %s2013_s14  }
 0x6e5   :  { %2008 = dma.done.wait [#allocation4], 256  }
 0x6e6   :  { %2009 = vsyncadd [#allocation4], 4294967040 }
 0x6e7   :  { %1668 = vsyncpa [#allocation3], 1 }
 0x6e8   :  { %1669 = vsyncpa [#allocation6], 1 }
 0x6e9   :  { %1670 = vsyncpa [#allocation4], 1 }

</bundles_post_ra>
